<compile_context>
chip_gen: v6e
topology: v6e:2x2x1
jax: 0.10.0
libtpu: 0.0.40
codegen_flags: <defaults>
</compile_context>

<pallas_src>
import functools

import jax
import jax.numpy as jnp
from jax.experimental import pallas as pl
from jax.experimental.pallas import tpu as pltpu


def _round_up(x, m):
    return (x + m - 1) // m * m


def _pick_tile(padded, max_tile):
    """Largest tile <= max_tile that divides `padded` (padded is a multiple of 128)."""
    if padded <= max_tile:
        return padded
    for cand in (1024, 768, 512, 384, 256, 128):
        if cand <= max_tile and padded % cand == 0:
            return cand
    return 128


def _modconv_kernel(patches_ref, w_ref, demod_ref, bias_ref, out_ref,
                    acc_ref, *, demodulate):
    """One (batch, HW-tile, Cout-tile, KKC-tile) grid step.

    patches_ref: [1, tm, tk] bf16  pre-modulated (scale * style) im2col tile
    w_ref:       [tk, tn]    bf16  shared (unmodulated) weight tile
    demod_ref:   [1, 1, tn]  f32   per-batch demodulation factors (lane-dense)
    bias_ref:    [1, tn]     f32
    out_ref:     [1, tm, tn]       output tile (resident across the k axis)
    acc_ref:     [tm, tn]    f32   matmul accumulator (scratch)
    """
    k = pl.program_id(3)

    @pl.when(k == 0)
    def _():
        acc_ref[...] = jnp.zeros_like(acc_ref)

    # Pure bf16 MXU matmul with fp32 accumulation; no per-step VALU work.
    acc_ref[...] += jnp.dot(patches_ref[0], w_ref[...],
                            preferred_element_type=jnp.float32)

    @pl.when(k == pl.num_programs(3) - 1)
    def _():
        acc = acc_ref[...]
        if demodulate:
            acc = acc * demod_ref[0]          # [1, tn] broadcast over tm rows
        out_ref[0] = (acc + bias_ref[...]).astype(out_ref.dtype)


def modulated_conv2d(x, style, weight, bias, mod_w, mod_b, *,
                     kernel_size=3, padding=1, demodulate=True):
    """x: [B, Cin, H, W] (NCHW), style: [B, style_dim]. Returns [B, Cout, H, W]."""
    B, Cin, H, W = x.shape
    Cout = weight.shape[0]
    K = kernel_size
    HW = H * W
    KKC = K * K * Cin
    scale = 1.0 / (Cin * K * K) ** 0.5

    # ---- padding to lane granularity (128) only; tiles then divide exactly ----
    cout_pad = _round_up(Cout, 128)
    kkc_pad = _round_up(KKC, 128)
    hw_pad = _round_up(HW, 128)

    tn = _pick_tile(cout_pad, 512)     # collapse the j axis when Cout <= 512
    tk = _pick_tile(kkc_pad, 1024)     # large tk amortizes the fp32 acc RMW
    tm = _pick_tile(hw_pad, 512)

    # v7x has 2 TensorCores: make sure the parallel grid exposes >= 2 tiles.
    while (B * (hw_pad // tm) * (cout_pad // tn) < 2 and tm > 128
           and (tm // 2) % 128 == 0 and hw_pad % (tm // 2) == 0):
        tm //= 2

    # ---- style modulation linear + conv scale, folded into the patches ----
    s = style @ mod_w.T + mod_b                                   # [B, Cin]
    s_scaled = (s * scale).astype(jnp.float32)
    s_taps = jnp.tile(s_scaled, (1, K * K))                       # [B, KKC] tap-major

    # ---- hoisted, exact fp32 demodulation: one tiny [B,Cin]x[Cin,Cout] matmul ----
    if demodulate:
        wsq = jnp.sum(weight.astype(jnp.float32) ** 2, axis=(2, 3))   # [Cout, Cin]
        d = jax.lax.rsqrt((s_scaled ** 2) @ wsq.T + 1e-8)             # [B, Cout]
    else:
        d = jnp.ones((B, Cout), jnp.float32)
    demod = jnp.pad(d, ((0, 0), (0, cout_pad - Cout))).reshape(B, 1, cout_pad)
    demod = demod.astype(jnp.float32)

    # ---- im2col (layout glue): NCHW -> padded NHWC -> [B, HW, KKC] ----
    # TODO(synk): drop the K*K im2col HBM expansion by accumulating K*K
    # tap-shifted sub-matmuls directly from the padded NHWC activation
    # (manual DMA / element-offset blocks); biggest remaining lever on v5e.
    x_nhwc = jnp.transpose(x, (0, 2, 3, 1)).astype(jnp.float32)
    xp = jnp.pad(x_nhwc, ((0, 0), (padding, padding), (padding, padding), (0, 0)))
    cols = [xp[:, kh:kh + H, kw:kw + W, :] for kh in range(K) for kw in range(K)]
    patches = jnp.concatenate(cols, axis=-1).reshape(B, HW, KKC)
    # Pre-modulate the patches (XLA fuses this into the pad/cast below).
    patches = patches * s_taps[:, None, :]
    patches = jnp.pad(patches, ((0, 0), (0, hw_pad - HW), (0, kkc_pad - KKC)))
    patches = patches.astype(jnp.bfloat16)                        # halve HBM traffic

    # ---- weight / bias, flattened to match the (kh, kw, ci) patch ordering ----
    w_flat = jnp.transpose(weight, (2, 3, 1, 0)).reshape(KKC, Cout)
    w_flat = jnp.pad(w_flat, ((0, kkc_pad - KKC), (0, cout_pad - Cout)))
    w_flat = w_flat.astype(jnp.bfloat16)
    bias_flat = jnp.pad(bias.reshape(1, Cout).astype(jnp.float32),
                        ((0, 0), (0, cout_pad - Cout)))

    grid = (B, hw_pad // tm, cout_pad // tn, kkc_pad // tk)
    kernel = functools.partial(_modconv_kernel, demodulate=demodulate)

    # Per-step double-buffered VMEM footprint (stays well under v7x's 64 MiB).
    vmem_bytes = (2 * tm * tk * 2            # patches (bf16, double-buffered)
                  + 2 * tk * tn * 2          # weight (bf16)
                  + 2 * tm * tn * 4          # output (f32)
                  + tm * tn * 4              # accumulator scratch
                  + 4 * tn * 8)              # demod + bias (tiny)
    vmem_limit = int(min(max(2 * vmem_bytes, 16 << 20), 40 << 20))

    hw_tiles = hw_pad // tm
    n_tiles = cout_pad // tn
    flops = 2 * B * hw_pad * kkc_pad * cout_pad
    bytes_accessed = (B * hw_pad * kkc_pad * 2 * n_tiles        # patches re-read per Cout tile
                      + kkc_pad * cout_pad * 2 * B * hw_tiles   # weight re-read per (b, hw) tile
                      + B * cout_pad * 4 + cout_pad * 4         # demod + bias
                      + B * hw_pad * cout_pad * 4)              # output writeback
    cost = pl.CostEstimate(flops=flops, transcendentals=0,
                           bytes_accessed=bytes_accessed)

    out = pl.pallas_call(
        kernel,
        out_shape=jax.ShapeDtypeStruct((B, hw_pad, cout_pad), x.dtype),
        grid=grid,
        in_specs=[
            pl.BlockSpec((1, tm, tk), lambda b, i, j, k: (b, i, k)),   # patches
            pl.BlockSpec((tk, tn), lambda b, i, j, k: (k, j)),         # weight
            pl.BlockSpec((1, 1, tn), lambda b, i, j, k: (b, 0, j)),    # demod
            pl.BlockSpec((1, tn), lambda b, i, j, k: (0, j)),          # bias
        ],
        out_specs=pl.BlockSpec((1, tm, tn), lambda b, i, j, k: (b, i, j)),
        scratch_shapes=[
            pltpu.VMEM((tm, tn), jnp.float32),   # matmul accumulator
        ],
        compiler_params=pltpu.CompilerParams(
            dimension_semantics=("parallel", "parallel", "parallel", "arbitrary"),
            vmem_limit_bytes=vmem_limit,
        ),
        cost_estimate=cost,
    )(patches, w_flat, demod, bias_flat)

    out = out[:, :HW, :Cout].reshape(B, H, W, Cout)
    # TODO(synk): NHWC consumers can skip this transpose (extra HBM pass).
    return jnp.transpose(out, (0, 3, 1, 2))                    # back to NCHW


def ref_modulated_conv2d(x, style, weight, bias, mod_w, mod_b, *,
                         kernel_size=3, padding=1, demodulate=True):
    """Plain-JAX reference mirroring the PyTorch forward exactly (fp32)."""
    B, Cin, H, W = x.shape
    Cout = weight.shape[0]
    K = kernel_size
    scale = 1.0 / (Cin * K * K) ** 0.5
    s = style @ mod_w.T + mod_b                                    # [B, Cin]
    w = scale * weight                                             # [Cout, Cin, K, K]
    w = w[None] * s[:, None, :, None, None]                        # [B, Cout, Cin, K, K]
    if demodulate:
        d = jax.lax.rsqrt(jnp.sum(w ** 2, axis=(2, 3, 4), keepdims=True) + 1e-8)
        w = w * d
    outs = []
    for b in range(B):  # grouped conv (groups=B) == per-batch conv
        o = jax.lax.conv_general_dilated(
            x[b:b + 1], w[b], window_strides=(1, 1),
            padding=[(padding, padding), (padding, padding)],
            dimension_numbers=("NCHW", "OIHW", "NCHW"),
            precision=jax.lax.Precision.HIGHEST)
        outs.append(o)
    return jnp.concatenate(outs, axis=0) + bias


if __name__ == "__main__":
    B, Cin, Cout, H, W = 2, 4, 8, 16, 16
    style_dim, K, pad = 32, 3, 1

    key = jax.random.PRNGKey(0)
    k1, k2, k3 = jax.random.split(key, 3)
    x = jax.random.normal(k1, (B, Cin, H, W), jnp.float32)
    style = jax.random.normal(k2, (B, style_dim), jnp.float32)

    # Parameters, initialized exactly like the module's __init__:
    fan_in = Cin * K * K
    weight = jax.random.normal(k3, (Cout, Cin, K, K), jnp.float32) * (2.0 / fan_in) ** 0.5
    bias = jnp.zeros((1, Cout, 1, 1), jnp.float32)          # zeros
    mod_w = jnp.ones((Cin, style_dim), jnp.float32)          # nn.init.ones_
    mod_b = jnp.zeros((Cin,), jnp.float32)                   # nn.init.zeros_

    out = modulated_conv2d(x, style, weight, bias, mod_w, mod_b,
                           kernel_size=K, padding=pad, demodulate=True)
    out = jax.block_until_ready(out)

    ref = ref_modulated_conv2d(x, style, weight, bias, mod_w, mod_b,
                               kernel_size=K, padding=pad, demodulate=True)

    assert out.shape == (B, Cout, H, W), out.shape
    max_err = float(jnp.max(jnp.abs(out - ref)))
    # Tolerance sized for bf16 MXU inputs with fp32 accumulation vs fp32 ref.
    if not jnp.allclose(out, ref, atol=2e-2, rtol=2e-2):
        raise AssertionError(f"Pallas output mismatch vs reference (max abs err {max_err})")
    print("KERNEL_OK")
</pallas_src>

<mosaic_0001>
module attributes {stable_mosaic.version = 11 : i64} {
  func.func @_modconv_kernel(%arg0: i32, %arg1: i32, %arg2: i32, %arg3: i32, %arg4: memref<1x256x128xbf16, #tpu.memory_space<vmem>>, %arg5: memref<128x128xbf16, #tpu.memory_space<vmem>>, %arg6: memref<1x1x128xf32, #tpu.memory_space<vmem>>, %arg7: memref<1x128xf32, #tpu.memory_space<vmem>>, %arg8: memref<1x256x128xf32, #tpu.memory_space<vmem>>, %arg9: memref<256x128xf32, #tpu.memory_space<vmem>>) attributes {dimension_semantics = [#tpu.dimension_semantics<parallel>, #tpu.dimension_semantics<parallel>, #tpu.dimension_semantics<parallel>, #tpu.dimension_semantics<arbitrary>], iteration_bounds = array<i64: 2, 1, 1, 1>, scalar_prefetch = 0 : i64, scratch_operands = 1 : i64, tpu.core_type = #tpu.core_type<tc>, window_params = [{transform_indices = @transform_0, window_bounds = array<i64: 1, 256, 128>}, {transform_indices = @transform_1, window_bounds = array<i64: 128, 128>}, {transform_indices = @transform_2, window_bounds = array<i64: 1, 1, 128>}, {transform_indices = @transform_3, window_bounds = array<i64: 1, 128>}, {transform_indices = @transform_4, window_bounds = array<i64: 1, 256, 128>}]} {
    %c0_i32 = arith.constant 0 : i32
    %0 = arith.cmpi eq, %arg3, %c0_i32 : i32
    %1 = arith.extui %0 : i1 to i32
    %c0_i32_0 = arith.constant 0 : i32
    %2 = arith.cmpi ne, %1, %c0_i32_0 : i32
    scf.if %2 {
      %cst_11 = arith.constant 0.000000e+00 : f32
      %13 = vector.broadcast %cst_11 : f32 to vector<256x128xf32>
      %c0_12 = arith.constant 0 : index
      %c0_13 = arith.constant 0 : index
      %14 = vector.load %arg9[%c0_12, %c0_13] : memref<256x128xf32, #tpu.memory_space<vmem>>, vector<256x128xf32>
      tpu.vector_store %arg9[%c0_12, %c0_13], %13 {strides = array<i32>} : memref<256x128xf32, #tpu.memory_space<vmem>>, vector<256x128xf32>,
    } else {
    }
    %c0 = arith.constant 0 : index
    %c0_1 = arith.constant 0 : index
    %3 = vector.load %arg9[%c0, %c0_1] : memref<256x128xf32, #tpu.memory_space<vmem>>, vector<256x128xf32>
    %c0_2 = arith.constant 0 : index
    %c0_3 = arith.constant 0 : index
    %c0_4 = arith.constant 0 : index
    %4 = vector.load %arg4[%c0_2, %c0_3, %c0_4] : memref<1x256x128xbf16, #tpu.memory_space<vmem>>, vector<1x256x128xbf16>
    %5 = vector.shape_cast %4 : vector<1x256x128xbf16> to vector<256x128xbf16>
    %c0_5 = arith.constant 0 : index
    %c0_6 = arith.constant 0 : index
    %6 = vector.load %arg5[%c0_5, %c0_6] : memref<128x128xbf16, #tpu.memory_space<vmem>>, vector<128x128xbf16>
    %cst = arith.constant dense<0.000000e+00> : vector<256x128xf32>
    %7 = tpu.matmul %5, %6, %cst {dimension_numbers = #tpu.dot_dimension_numbers<[1], [0], [0], [1], [0, 0, 1, 1], [], []>} : vector<256x128xbf16>, vector<128x128xbf16>, vector<256x128xf32> -> vector<256x128xf32>
    %8 = arith.addf %3, %7 : vector<256x128xf32>
    %c0_7 = arith.constant 0 : index
    %c0_8 = arith.constant 0 : index
    %9 = vector.load %arg9[%c0_7, %c0_8] : memref<256x128xf32, #tpu.memory_space<vmem>>, vector<256x128xf32>
    tpu.vector_store %arg9[%c0_7, %c0_8], %8 {strides = array<i32>} : memref<256x128xf32, #tpu.memory_space<vmem>>, vector<256x128xf32>,
    %c0_i32_9 = arith.constant 0 : i32
    %10 = arith.cmpi eq, %arg3, %c0_i32_9 : i32
    %11 = arith.extui %10 : i1 to i32
    %c0_i32_10 = arith.constant 0 : i32
    %12 = arith.cmpi ne, %11, %c0_i32_10 : i32
    scf.if %12 {
      %c0_11 = arith.constant 0 : index
      %c0_12 = arith.constant 0 : index
      %13 = vector.load %arg9[%c0_11, %c0_12] : memref<256x128xf32, #tpu.memory_space<vmem>>, vector<256x128xf32>
      %c0_13 = arith.constant 0 : index
      %c0_14 = arith.constant 0 : index
      %c0_15 = arith.constant 0 : index
      %14 = vector.load %arg6[%c0_13, %c0_14, %c0_15] : memref<1x1x128xf32, #tpu.memory_space<vmem>>, vector<1x1x128xf32>
      %15 = vector.shape_cast %14 : vector<1x1x128xf32> to vector<1x128xf32>
      %16 = vector.broadcast %15 : vector<1x128xf32> to vector<256x128xf32>
      %17 = arith.mulf %13, %16 : vector<256x128xf32>
      %c0_16 = arith.constant 0 : index
      %c0_17 = arith.constant 0 : index
      %18 = vector.load %arg7[%c0_16, %c0_17] : memref<1x128xf32, #tpu.memory_space<vmem>>, vector<1x128xf32>
      %19 = vector.broadcast %18 : vector<1x128xf32> to vector<256x128xf32>
      %20 = arith.addf %17, %19 : vector<256x128xf32>
      %c0_18 = arith.constant 0 : index
      %c0_19 = arith.constant 0 : index
      %c0_20 = arith.constant 0 : index
      %21 = vector.load %arg8[%c0_18, %c0_19, %c0_20] : memref<1x256x128xf32, #tpu.memory_space<vmem>>, vector<1x256x128xf32>
      %22 = vector.shape_cast %21 : vector<1x256x128xf32> to vector<256x128xf32>
      %23 = vector.shape_cast %20 : vector<256x128xf32> to vector<1x256x128xf32>
      tpu.vector_store %arg8[%c0_18, %c0_19, %c0_20], %23 {strides = array<i32>} : memref<1x256x128xf32, #tpu.memory_space<vmem>>, vector<1x256x128xf32>,
    } else {
    }
    return
  }
  func.func @transform_0(%arg0: i32, %arg1: i32, %arg2: i32, %arg3: i32) -> (i32, i32, i32) {
    %c0_i32 = arith.constant 0 : i32
    return %arg0, %arg1, %arg3 : i32, i32, i32
  }
  func.func @transform_1(%arg0: i32, %arg1: i32, %arg2: i32, %arg3: i32) -> (i32, i32) {
    %c0_i32 = arith.constant 0 : i32
    return %arg3, %arg2 : i32, i32
  }
  func.func @transform_2(%arg0: i32, %arg1: i32, %arg2: i32, %arg3: i32) -> (i32, i32, i32) {
    %c0_i32 = arith.constant 0 : i32
    %c0_i32_0 = arith.constant 0 : i32
    return %arg0, %c0_i32, %arg2 : i32, i32, i32
  }
  func.func @transform_3(%arg0: i32, %arg1: i32, %arg2: i32, %arg3: i32) -> (i32, i32) {
    %c0_i32 = arith.constant 0 : i32
    %c0_i32_0 = arith.constant 0 : i32
    return %c0_i32, %arg2 : i32, i32
  }
  func.func @transform_4(%arg0: i32, %arg1: i32, %arg2: i32, %arg3: i32) -> (i32, i32, i32) {
    %c0_i32 = arith.constant 0 : i32
    return %arg0, %arg1, %arg2 : i32, i32, i32
  }
}

</mosaic_0001>

<bundles_post_ra>
// kernel: tpu_custom_call.1
= control target key start
LH: loop header
LB: loop body
LE: loop exit
PB: predicated region body
PF: predicated region fallthrough
CT: control target
= control target key end

     0   :  { %s1826_s0 = inlined_call_operand.hbm [shape: bf16[2,256,128], index: 0, kind: input, shape index: {}]   ;;  %s1827_s1 = inlined_call_operand.hbm [shape: bf16[128,128], index: 1, kind: input, shape index: {}]   ;;  %s1828_s2 = inlined_call_operand.vmem [shape: f32[2,1,128], index: 2, kind: input, shape index: {}]   ;;  %s1829_s3 = inlined_call_operand.vmem [shape: f32[1,128], index: 3, kind: input, shape index: {}]   ;;  %s1830_s4 = inlined_call_operand.hbm [shape: f32[2,256,128], index: 4, kind: output, shape index: {}]  }
   0x1   :  { %1834 = sst [smem:[#allocation12_spill]] %s1827_s1 }
   0x2   :  { %9 = vsyncpa [#allocation4], 0 }
   0x3   :  { %11 = vsyncpa [#allocation4 + $0x1], 0 }
   0x4   :  { %12 = vsyncpa [#allocation7], 0 }
   0x5   :  { %13 = vsyncpa [#allocation5], 0 }
   0x6   :  { %15 = vsyncpa [#allocation5 + $0x1], 0  ;;  %s1509_s15 = smov 0   ;;  %s1511_s16 = smov 0  }
   0x7   :  { %s1513_s17 = smov 0   ;;  %s1515_s18 = smov 0  }
   0x8   :  { %s1517_s19 = smov 0   ;;  %s1519_s20 = smov 0  }
   0x9 LB: > { %s1102_s21 = sadd.s32 4294967295, %s1475_s20   ;;  %s1103_s22 = sadd.s32 4294967294, %s1475_s20   ;;  %s1475_s20 = sphi %s1519_s20, %s21_s20   ;;  %s1471_s19 = sphi %s1517_s19, %s1854_s19   ;;  %s1467_s18 = sphi %s1515_s18, %s1853_s18   ;;  %s1463_s17 = sphi %s1513_s17, %s1852_s17   ;;  %s1459_s16 = sphi %s1511_s16, %s1851_s16   ;;  %s1455_s15 = sphi %s1509_s15, %s1850_s15  }
   0xa   : > { %p71_p0 = scmp.ne.s32.totalorder %s1459_s16, %s1455_s15  ;;  %p1543_p1 = scmp.eq.s32.totalorder %s1102_s21, 0 }
   0xb   : > { %p1547_p2 = scmp.eq.s32.totalorder %s1102_s21, 1  ;;  %p187_p3 = scmp.eq.s32.totalorder %s1103_s22, 1 }
   0xc   : > { %p1553_p4 = por %p1543_p1, %p71_p0  ;;  %p1104_p5 = scmp.ge.s32.totalorder %s1475_s20, 1 }
   0xd   : > { %p1558_p6 = por %p187_p3, %p71_p0  ;;  %p194_p7 = scmp.lt.s32.totalorder %s1475_s20, 3 }
   0xe   : > { %s1837_s25 = scalar_select %p1553_p4, 1, 0 }
   0xf   : > { %s1838_s26 = scalar_select %p1558_p6, 1, 0 }
  0x10   : > { %p1563_p8 = pnand %p1104_p5, %p194_p7  ;;  %s1477_s28 = smov [#allocation6]  }
  0x11   : > { %s210_s29 = sshll.u32 %s1477_s28, 4  ;;  %s47_s5 = sadd.s32 1, %s1471_s19  ;;  %s211_s29 = int_to_ptr.vmem [resolvable:$true] %s210_s29 }
  0x12   : > { %p1244_p9 = pneg %p1563_p8  ;;  %s1348_s6 = scalar_lea.vmem %s211_s29, 1024 }
  0x13   : > { %p1349_p13 = scmp.ne.s32.totalorder %s211_s29, %s1348_s6  ;;  %p1356_p5 = scmp.lt.s32.totalorder %s211_s29, %s211_s29 }
  0x14   : > { %p1572_p11 = pnand %p1244_p9, %p1543_p1  ;;  %p1357_p7 = scmp.lt.s32.totalorder %s1348_s6, %s1348_s6 }
  0x16   : > { %p1339_p12 = pneg %p1572_p11  ;;  %p1358_p6 = por %p1357_p7, %p1356_p5 }
  0x18   : > { %p1351_p0 = pnand %p1349_p13, %p1339_p12 }
  0x1a   : > { %p1352_p3 = pneg %p1351_p0 }
  0x1c   : > { %p1359_p4 = pnand %p1358_p6, %p1352_p3 }
  0x1e   : > { %1362 = shalt.err (!%p1359_p4)
}
  0x1f   : > { %s1832_s7 = smov 64   ;;  %s1833_s8 = smov 4  }
  0x20   : > { %s1841_s1 = sld [smem:[#allocation12_spill]]  ;;  %p49_p4 = scmp.ge.s32.totalorder %s47_s5, 2 }
  0x21   : > { %s58_s11 = sadd.s32 1, %s1463_s17  ;;  %p65_p6 = scmp.ne.s32.totalorder %s1463_s17, %s1459_s16 }
  0x22   : > { %p66_p9 = scmp.eq.s32.totalorder %s1475_s20, 0  ;;  %s1856_s5 = smov (%p49_p4, %s47_s5), 0 }
  0x23   : > { %p1599_p13 = por %p1547_p2, %p65_p6  ;;  %s51_s14 = ssub.s32 %s1471_s19, %s1856_s5 }
  0x24   : > { %p1593_p12 = por %p66_p9, %p65_p6  ;;  %p1257_p0 = scmp.lt.s32.totalorder %s1475_s20, 2 }
  0x25   : > { %s230_s21 = sand.u32 1, %s1463_s17  }
  0x26   : > { %1247 = dma.hbm_to_vmem [thread:$0]  (!%p1572_p11), %s1841_s1, 1024, %s211_s29, [#allocation7], %s1832_s7, %s1832_s7, %s1833_s8  }
  0x27   : > { %p56_p11 = scmp.eq.s32.totalorder %s51_s14, 0  ;;  %s1108_s22 = sshll.u32 %s230_s21, 7 }
  0x28   : > { %s1146_s29 = sshll.u32 %s1471_s19, 11  ;;  %s234_s10 = scalar_lea.vmem [#allocation3], %s1108_s22 }
  0x29   : > { %s1608_s28 = scalar_select %p56_p11, %s1463_s17, %s58_s11  }
  0x2a   : > { %s243_s9 = scalar_lea.hbm %s1826_s0, %s1146_s29  ;;  %s244_s7 = sshll.u32 %s234_s10, 4  ;;  %s245_s7 = int_to_ptr.vmem [resolvable:$true] %s244_s7 }
  0x2b   : > { %p1616_p2 = pnand %p1257_p0, %p1593_p12  ;;  %s231_s8 = scalar_lea.sflag [#allocation4], %s230_s21 }
  0x2c   : > { %s1376_s14 = scalar_lea.vmem %s245_s7, 2048  ;;  %s1480_s11 = smov [#allocation3]  }
  0x2d   : > { %p1365_p3 = pneg %p1616_p2  ;;  %p1377_p5 = scmp.ne.s32.totalorder %s245_s7, %s1376_s14 }
  0x2e   : > { %s1381_s1 = sshll.u32 %s1480_s11, 4  ;;  %s1382_s1 = int_to_ptr.vmem [resolvable:$false] %s1381_s1 }
  0x2f   : > { %p1379_p7 = pnand %p1377_p5, %p1365_p3  ;;  %s1383_s29 = scalar_lea.vmem %s1382_s1, 4096 }
  0x30   : > { %p1384_p6 = scmp.lt.s32.totalorder %s245_s7, %s1382_s1  ;;  %p1385_p9 = scmp.lt.s32.totalorder %s1383_s29, %s1376_s14 }
  0x31   : > { %p1380_p4 = pneg %p1379_p7 }
  0x32   : > { %p1386_p11 = por %p1385_p9, %p1384_p6 }
  0x34   : > { %p1387_p10 = pnand %p1386_p11, %p1380_p4 }
  0x36   : > { %1390 = shalt.err (!%p1387_p10)
}
  0x37   : > { %s1845_s12 = smov 4   ;;  %s1846_s22 = smov 64  }
  0x38   : > { %1251 = dma.hbm_to_vmem [thread:$0]  (!%p1616_p2), %s243_s9, 2048, %s245_s7, %s231_s8, %s1846_s22, %s1846_s22, %s1845_s12  }
  0x39   : > { %265 = sbr.rel (%p1563_p8) target bundleno = 339 (0x153), region = 36  ;;  %s1630_s21 = sand.u32 (!%p1563_p8), 1, %s1459_s16  }
  0x3a   : > { %s1112_s1 = sshll.u32 (!%p1563_p8), %s1630_s21, 7  ;;  %s268_s30 = scalar_lea.sflag (!%p1563_p8), [#allocation4], %s1630_s21 }
  0x3b   : > { %s1634_s6 = scalar_lea.vmem (!%p1563_p8), [#allocation3], %s1112_s1  ;;  %p1847_p10 = scmp.ne.s32.totalorder (!%p1563_p8), %s1837_s25, 0 }
  0x3e   : > { %1442 = dma.done.wait (%p1847_p10), %s268_s30, 2048  }
  0x3f   : > { %1444 = vsyncadd (%p1847_p10), %s268_s30, 4294965248 }
  0x40   : > { %1446 = dma.done.wait (%p1543_p1), [#allocation7], 1024  }
  0x41   : > { %1448 = vsyncadd (%p1543_p1), [#allocation7], 4294966272  ;;  %v1313_v0 = vld [vmem:[#allocation6 + $0x38] sm:$0xff]   ;;  %v1314_v1 = vld [vmem:[#allocation6 + $0x30] sm:$0xff]   ;;  %p311_p1 = scmp.lt.s32.totalorder %s1467_s18, 1  ;;  %s1114_s8 = sshll.u32 %s1630_s21, 8 }
  0x42   : > { %1172 = vmatprep.subr.bf16.mxu0 %v1313_v0  ;;  %1220 = vmatprep.subr.bf16.mxu1 %v1313_v0  ;;  %v1315_v2 = vld [vmem:[#allocation6 + $0x28] sm:$0xff]   ;;  %v1316_v3 = vld [vmem:[#allocation6 + $0x20] sm:$0xff]   ;;  %v1317_v6 = vld [vmem:[#allocation6 + $0x18] sm:$0xff]   ;;  %s1679_s24 = scalar_lea.vmem [#allocation8], %s1114_s8  ;;  %s1147_s14 = sshll.u32 %s1467_s18, 12 }
  0x43   : > { %1173 = vmatpush3.bf16.msra.mxu0 %v1313_v0  ;;  %1228 = vmatpush3.bf16.msra.mxu1 %v1313_v0  ;;  %v1321_v4 = vld [vmem:[%s1634_s6] sm:$0xff]   ;;  %v1318_v7 = vld [vmem:[#allocation6 + $0x10] sm:$0xff]   ;;  %v1319_v8 = vld [vmem:[#allocation6 + $0x8] sm:$0xff]   ;;  %s312_s23 = scalar_select %p311_p1, %s1467_s18, 1 }
  0x44   : > { %1174 = vmatprep.subr.bf16.mxu0 %v1314_v1  ;;  %1221 = vmatprep.subr.bf16.mxu1 %v1314_v1  ;;  %v1322_v5 = vld [vmem:[%s1634_s6 + $0x40] sm:$0xff]   ;;  %v1323_v10 = vld [vmem:[%s1634_s6 + $0x8] sm:$0xff]   ;;  %v1325_v12 = vld [vmem:[%s1634_s6 + $0x10] sm:$0xff]   ;;  %s969_s11 = sshll.u32 %s1679_s24, 4  ;;  %s1770_s18 = scalar_lea.hbm %s1830_s4, %s1147_s14  ;;  %s1772_s11 = int_to_ptr.vmem [resolvable:$true] %s969_s11 }
  0x45   : > { %1188 = vmatprep.mubr.bf16.mxu0 %v1321_v4  ;;  %1204 = vmatprep.mubr.bf16.mxu1 %v1322_v5  ;;  %v1320_v9 = vld [vmem:[#allocation6] sm:$0xff]   ;;  %v1324_v11 = vld [vmem:[%s1634_s6 + $0x48] sm:$0xff]   ;;  %v1326_v13 = vld [vmem:[%s1634_s6 + $0x50] sm:$0xff]   ;;  %s316_s7 = scalar_lea.vmem %s1828_s2, %s312_s23  ;;  %s953_s22 = scalar_lea.sflag [#allocation5], %s1630_s21 }
  0x46   : > { %v1327_v14 = vld [vmem:[%s1634_s6 + $0x18] sm:$0xff]   ;;  %v1329_v16 = vld [vmem:[%s1634_s6 + $0x20] sm:$0xff]   ;;  %v1331_v18 = vld [vmem:[%s1634_s6 + $0x28] sm:$0xff]   ;;  %s1391_s1 = scalar_lea.vmem %s1772_s11, 4096  ;;  %s1481_s30 = smov [#allocation8]  }
  0x47   : > { %1175 = vmatpush3.bf16.msra.mxu0 %v1314_v1  ;;  %1229 = vmatpush3.bf16.msra.mxu1 %v1314_v1  ;;  %v1328_v15 = vld [vmem:[%s1634_s6 + $0x58] sm:$0xff]   ;;  %v1330_v17 = vld [vmem:[%s1634_s6 + $0x60] sm:$0xff]   ;;  %v1332_v19 = vld [vmem:[%s1634_s6 + $0x68] sm:$0xff]   ;;  %p1392_p8 = scmp.ne.s32.totalorder %s1772_s11, %s1391_s1 }
  0x48   : > { %1176 = vmatprep.subr.bf16.mxu0 %v1315_v2  ;;  %1222 = vmatprep.subr.bf16.mxu1 %v1315_v2  ;;  %v1333_v20 = vld [vmem:[%s1634_s6 + $0x30] sm:$0xff]   ;;  %v1335_v22 = vld [vmem:[%s1634_s6 + $0x38] sm:$0xff]   ;;  %v1665_v24 = vld [vmem:[%s316_s7] ss:$0 sm:$0xff] }
  0x49   : > { %v1334_v21 = vld [vmem:[%s1634_s6 + $0x70] sm:$0xff]   ;;  %v1336_v23 = vld [vmem:[%s1634_s6 + $0x78] sm:$0xff]   ;;  %v1671_v26 = vld [vmem:[%s1829_s3] ss:$0 sm:$0xff]  ;;  %p1393_p12 = pnand %p1392_p8, %p1599_p13  ;;  %s1395_s6 = sshll.u32 %s1481_s30, 4  ;;  %s1396_s6 = int_to_ptr.vmem [resolvable:$false] %s1395_s6 }
  0x4a   : > { %s1397_s23 = scalar_lea.vmem %s1396_s6, 8192  ;;  %p1398_p2 = scmp.lt.s32.totalorder %s1772_s11, %s1396_s6 }
  0x4b   : > { %1177 = vmatpush3.bf16.msra.mxu0 %v1315_v2  ;;  %1230 = vmatpush3.bf16.msra.mxu1 %v1315_v2  ;;  %p1394_p0 = pneg %p1393_p12  ;;  %p1399_p3 = scmp.lt.s32.totalorder %s1397_s23, %s1391_s1 }
  0x4c   : > { %1178 = vmatprep.subr.bf16.mxu0 %v1316_v3  ;;  %1223 = vmatprep.subr.bf16.mxu1 %v1316_v3 }
  0x4d   : > { %p1400_p5 = por %p1399_p3, %p1398_p2 }
  0x4f   : > { %1179 = vmatpush3.bf16.msra.mxu0 %v1316_v3  ;;  %1231 = vmatpush3.bf16.msra.mxu1 %v1316_v3  ;;  %p1401_p7 = pnand %p1400_p5, %p1394_p0 }
  0x50   : > { %1180 = vmatprep.subr.bf16.mxu0 %v1317_v6  ;;  %1224 = vmatprep.subr.bf16.mxu1 %v1317_v6 }
  0x53   : > { %1181 = vmatpush3.bf16.msra.mxu0 %v1317_v6  ;;  %1232 = vmatpush3.bf16.msra.mxu1 %v1317_v6 }
  0x54   : > { %1182 = vmatprep.subr.bf16.mxu0 %v1318_v7  ;;  %1225 = vmatprep.subr.bf16.mxu1 %v1318_v7 }
  0x57   : > { %1183 = vmatpush3.bf16.msra.mxu0 %v1318_v7  ;;  %1233 = vmatpush3.bf16.msra.mxu1 %v1318_v7 }
  0x58   : > { %1184 = vmatprep.subr.bf16.mxu0 %v1319_v8  ;;  %1226 = vmatprep.subr.bf16.mxu1 %v1319_v8 }
  0x5b   : > { %1185 = vmatpush3.bf16.msra.mxu0 %v1319_v8  ;;  %1234 = vmatpush3.bf16.msra.mxu1 %v1319_v8 }
  0x5c   : > { %1186 = vmatprep.subr.bf16.mxu0 %v1320_v9  ;;  %1227 = vmatprep.subr.bf16.mxu1 %v1320_v9 }
  0x5f   : > { %1187 = vmatpush3.bf16.msra.mxu0 %v1320_v9  ;;  %1235 = vmatpush3.bf16.msra.mxu1 %v1320_v9 }
  0x62   : > { %1189 = vmatmul.mubr.bf16.vlgmr.msra.gmra.mxu0 %v1323_v10  ;;  %1205 = vmatmul.mubr.bf16.vlgmr.msra.gmra.mxu1 %v1324_v11 }
  0x63   : > { %1192 = vmatprep.mubr.bf16.mxu0 %v1325_v12  ;;  %1208 = vmatprep.mubr.bf16.mxu1 %v1326_v13 }
  0x6a   : > { %1193 = vmatmul.mubr.bf16.gmra.mxu0 %v1327_v14  ;;  %1209 = vmatmul.mubr.bf16.gmra.mxu1 %v1328_v15 }
  0x6b   : > { %1196 = vmatprep.mubr.bf16.mxu0 %v1329_v16  ;;  %1212 = vmatprep.mubr.bf16.mxu1 %v1330_v17 }
  0x72   : > { %1197 = vmatmul.mubr.bf16.gmra.mxu0 %v1331_v18  ;;  %1213 = vmatmul.mubr.bf16.gmra.mxu1 %v1332_v19 }
  0x73   : > { %1200 = vmatprep.mubr.bf16.mxu0 %v1333_v20  ;;  %1216 = vmatprep.mubr.bf16.mxu1 %v1334_v21 }
  0x7a   : > { %1201 = vmatmul.mubr.bf16.gmra.mxu0 %v1335_v22  ;;  %1217 = vmatmul.mubr.bf16.gmra.mxu1 %v1336_v23 }
 0x122   : > { %v1190_v25 = vpop.f32.mrf.mxu0  ;;  %v1206_v27 = vpop.f32.mrf.mxu1 }
 0x123   : > { %v851_v28 = vmul.f32 %v1190_v25, %v1665_v24  ;;  %v867_v29 = vmul.f32 %v1206_v27, %v1665_v24 }
 0x124   : > { %v616_v30 = vpop.f32.mrf.mxu0  ;;  %v680_v31 = vpop.f32.mrf.mxu1 }
 0x125   : > { %v890_v32 = vadd.f32 %v1671_v26, %v851_v28  ;;  %v906_v33 = vadd.f32 %v1671_v26, %v867_v29  ;;  %v849_v34 = vmul.f32 %v1665_v24, %v616_v30  ;;  %v865_v35 = vmul.f32 %v1665_v24, %v680_v31 }
 0x126   : > { %v1191_v36 = vpop.f32.mrf.mxu0  ;;  %v1207_v37 = vpop.f32.mrf.mxu1 }
 0x127   : > { %922 = vst [vmem:[%s1679_s24 + $0x10] sm:$0xff] %v890_v32  ;;  %938 = vst [vmem:[%s1679_s24 + $0x90] sm:$0xff] %v906_v33  ;;  %v888_v38 = vadd.f32 %v1671_v26, %v849_v34  ;;  %v904_v39 = vadd.f32 %v1671_v26, %v865_v35  ;;  %v852_v40 = vmul.f32 %v1191_v36, %v1665_v24 }
 0x128   : > { %v868_v41 = vmul.f32 %v1207_v37, %v1665_v24  ;;  %v619_v42 = vpop.f32.mrf.mxu0  ;;  %v683_v43 = vpop.f32.mrf.mxu1 }
 0x129   : > { %920 = vst [vmem:[%s1679_s24] sm:$0xff] %v888_v38  ;;  %936 = vst [vmem:[%s1679_s24 + $0x80] sm:$0xff] %v904_v39  ;;  %v891_v44 = vadd.f32 %v1671_v26, %v852_v40  ;;  %v850_v46 = vmul.f32 %v1665_v24, %v619_v42  ;;  %v866_v47 = vmul.f32 %v1665_v24, %v683_v43 }
 0x12a   : > { %v907_v45 = vadd.f32 %v1671_v26, %v868_v41  ;;  %v1194_v48 = vpop.f32.mrf.mxu0  ;;  %v1210_v49 = vpop.f32.mrf.mxu1 }
 0x12b   : > { %923 = vst [vmem:[%s1679_s24 + $0x18] sm:$0xff] %v891_v44  ;;  %v889_v50 = vadd.f32 %v1671_v26, %v850_v46  ;;  %v905_v51 = vadd.f32 %v1671_v26, %v866_v47  ;;  %v855_v52 = vmul.f32 %v1194_v48, %v1665_v24  ;;  %v871_v53 = vmul.f32 %v1210_v49, %v1665_v24 }
 0x12c   : > { %939 = vst [vmem:[%s1679_s24 + $0x98] sm:$0xff] %v907_v45  ;;  %v632_v54 = vpop.f32.mrf.mxu0  ;;  %v696_v55 = vpop.f32.mrf.mxu1 }
 0x12d   : > { %921 = vst [vmem:[%s1679_s24 + $0x8] sm:$0xff] %v889_v50  ;;  %937 = vst [vmem:[%s1679_s24 + $0x88] sm:$0xff] %v905_v51  ;;  %v894_v56 = vadd.f32 %v1671_v26, %v855_v52  ;;  %v910_v57 = vadd.f32 %v1671_v26, %v871_v53  ;;  %v853_v58 = vmul.f32 %v1665_v24, %v632_v54 }
 0x12e   : > { %v869_v59 = vmul.f32 %v1665_v24, %v696_v55  ;;  %v1195_v60 = vpop.f32.mrf.mxu0  ;;  %v1211_v61 = vpop.f32.mrf.mxu1 }
 0x12f   : > { %926 = vst [vmem:[%s1679_s24 + $0x30] sm:$0xff] %v894_v56  ;;  %942 = vst [vmem:[%s1679_s24 + $0xb0] sm:$0xff] %v910_v57  ;;  %v892_v62 = vadd.f32 %v1671_v26, %v853_v58  ;;  %v856_v0 = vmul.f32 %v1195_v60, %v1665_v24  ;;  %v872_v1 = vmul.f32 %v1211_v61, %v1665_v24 }
 0x130   : > { %v908_v63 = vadd.f32 %v1671_v26, %v869_v59  ;;  %v635_v2 = vpop.f32.mrf.mxu0  ;;  %v699_v3 = vpop.f32.mrf.mxu1 }
 0x131   : > { %924 = vst [vmem:[%s1679_s24 + $0x20] sm:$0xff] %v892_v62  ;;  %v895_v4 = vadd.f32 %v1671_v26, %v856_v0  ;;  %v911_v5 = vadd.f32 %v1671_v26, %v872_v1  ;;  %v854_v6 = vmul.f32 %v1665_v24, %v635_v2  ;;  %v870_v7 = vmul.f32 %v1665_v24, %v699_v3 }
 0x132   : > { %940 = vst [vmem:[%s1679_s24 + $0xa0] sm:$0xff] %v908_v63  ;;  %v1198_v8 = vpop.f32.mrf.mxu0  ;;  %v1214_v9 = vpop.f32.mrf.mxu1 }
 0x133   : > { %927 = vst [vmem:[%s1679_s24 + $0x38] sm:$0xff] %v895_v4  ;;  %943 = vst [vmem:[%s1679_s24 + $0xb8] sm:$0xff] %v911_v5  ;;  %v893_v10 = vadd.f32 %v1671_v26, %v854_v6  ;;  %v909_v11 = vadd.f32 %v1671_v26, %v870_v7  ;;  %v859_v12 = vmul.f32 %v1198_v8, %v1665_v24 }
 0x134   : > { %v875_v13 = vmul.f32 %v1214_v9, %v1665_v24  ;;  %v648_v14 = vpop.f32.mrf.mxu0  ;;  %v712_v15 = vpop.f32.mrf.mxu1 }
 0x135   : > { %925 = vst [vmem:[%s1679_s24 + $0x28] sm:$0xff] %v893_v10  ;;  %941 = vst [vmem:[%s1679_s24 + $0xa8] sm:$0xff] %v909_v11  ;;  %v898_v16 = vadd.f32 %v1671_v26, %v859_v12  ;;  %v857_v18 = vmul.f32 %v1665_v24, %v648_v14  ;;  %v873_v19 = vmul.f32 %v1665_v24, %v712_v15 }
 0x136   : > { %v914_v17 = vadd.f32 %v1671_v26, %v875_v13  ;;  %v1199_v20 = vpop.f32.mrf.mxu0  ;;  %v1215_v21 = vpop.f32.mrf.mxu1 }
 0x137   : > { %930 = vst [vmem:[%s1679_s24 + $0x50] sm:$0xff] %v898_v16  ;;  %v896_v22 = vadd.f32 %v1671_v26, %v857_v18  ;;  %v912_v23 = vadd.f32 %v1671_v26, %v873_v19  ;;  %v860_v25 = vmul.f32 %v1199_v20, %v1665_v24  ;;  %v876_v27 = vmul.f32 %v1215_v21, %v1665_v24 }
 0x138   : > { %946 = vst [vmem:[%s1679_s24 + $0xd0] sm:$0xff] %v914_v17  ;;  %v651_v28 = vpop.f32.mrf.mxu0  ;;  %v715_v29 = vpop.f32.mrf.mxu1 }
 0x139   : > { %928 = vst [vmem:[%s1679_s24 + $0x40] sm:$0xff] %v896_v22  ;;  %944 = vst [vmem:[%s1679_s24 + $0xc0] sm:$0xff] %v912_v23  ;;  %v899_v30 = vadd.f32 %v1671_v26, %v860_v25  ;;  %v915_v31 = vadd.f32 %v1671_v26, %v876_v27  ;;  %v858_v32 = vmul.f32 %v1665_v24, %v651_v28 }
 0x13a   : > { %v874_v33 = vmul.f32 %v1665_v24, %v715_v29  ;;  %v1202_v34 = vpop.f32.mrf.mxu0  ;;  %v1218_v35 = vpop.f32.mrf.mxu1 }
 0x13b   : > { %931 = vst [vmem:[%s1679_s24 + $0x58] sm:$0xff] %v899_v30  ;;  %947 = vst [vmem:[%s1679_s24 + $0xd8] sm:$0xff] %v915_v31  ;;  %v897_v36 = vadd.f32 %v1671_v26, %v858_v32  ;;  %v863_v38 = vmul.f32 %v1202_v34, %v1665_v24  ;;  %v879_v39 = vmul.f32 %v1218_v35, %v1665_v24 }
 0x13c   : > { %v913_v37 = vadd.f32 %v1671_v26, %v874_v33  ;;  %v664_v40 = vpop.f32.mrf.mxu0  ;;  %v728_v41 = vpop.f32.mrf.mxu1 }
 0x13d   : > { %929 = vst [vmem:[%s1679_s24 + $0x48] sm:$0xff] %v897_v36  ;;  %v902_v42 = vadd.f32 %v1671_v26, %v863_v38  ;;  %v918_v43 = vadd.f32 %v1671_v26, %v879_v39  ;;  %v861_v44 = vmul.f32 %v1665_v24, %v664_v40  ;;  %v877_v45 = vmul.f32 %v1665_v24, %v728_v41 }
 0x13e   : > { %945 = vst [vmem:[%s1679_s24 + $0xc8] sm:$0xff] %v913_v37  ;;  %v1203_v46 = vpop.f32.mrf.mxu0  ;;  %v1219_v47 = vpop.f32.mrf.mxu1 }
 0x13f   : > { %934 = vst [vmem:[%s1679_s24 + $0x70] sm:$0xff] %v902_v42  ;;  %950 = vst [vmem:[%s1679_s24 + $0xf0] sm:$0xff] %v918_v43  ;;  %v900_v48 = vadd.f32 %v1671_v26, %v861_v44  ;;  %v916_v49 = vadd.f32 %v1671_v26, %v877_v45  ;;  %v864_v50 = vmul.f32 %v1203_v46, %v1665_v24 }
 0x140   : > { %v880_v51 = vmul.f32 %v1219_v47, %v1665_v24  ;;  %v667_v52 = vpop.f32.mrf.mxu0  ;;  %v731_v53 = vpop.f32.mrf.mxu1 }
 0x141   : > { %932 = vst [vmem:[%s1679_s24 + $0x60] sm:$0xff] %v900_v48  ;;  %948 = vst [vmem:[%s1679_s24 + $0xe0] sm:$0xff] %v916_v49  ;;  %v903_v54 = vadd.f32 %v1671_v26, %v864_v50  ;;  %v862_v56 = vmul.f32 %v1665_v24, %v667_v52  ;;  %v878_v57 = vmul.f32 %v1665_v24, %v731_v53 }
 0x142   : > { %v919_v55 = vadd.f32 %v1671_v26, %v880_v51 }
 0x143   : > { %935 = vst [vmem:[%s1679_s24 + $0x78] sm:$0xff] %v903_v54  ;;  %v901_v58 = vadd.f32 %v1671_v26, %v862_v56  ;;  %v917_v59 = vadd.f32 %v1671_v26, %v878_v57 }
 0x144   : > { %951 = vst [vmem:[%s1679_s24 + $0xf8] sm:$0xff] %v919_v55 }
 0x145   : > { %933 = vst [vmem:[%s1679_s24 + $0x68] sm:$0xff] %v901_v58  ;;  %949 = vst [vmem:[%s1679_s24 + $0xe8] sm:$0xff] %v917_v59 }
 0x146   : > { %1404 = shalt.err (!%p1401_p7)
}
 0x147   : > { %s1405_s25 = scalar_lea.hbm %s1770_s18, 4096  ;;  %s1409_s8 = scalar_lea.hbm %s1830_s4, 8192 }
 0x148   : > { %p1406_p4 = scmp.ne.s32.totalorder %s1770_s18, %s1405_s25  ;;  %p1410_p11 = scmp.lt.s32.totalorder %s1770_s18, %s1830_s4 }
 0x149   : > { %p1411_p10 = scmp.lt.s32.totalorder %s1409_s8, %s1405_s25 }
 0x14a   : > { %p1407_p6 = pnand %p1406_p4, %p1599_p13 }
 0x14b   : > { %p1412_p1 = por %p1411_p10, %p1410_p11 }
 0x14c   : > { %p1408_p9 = pneg %p1407_p6 }
 0x14e   : > { %p1413_p8 = pnand %p1412_p1, %p1408_p9 }
 0x150   : > { %1416 = shalt.err (!%p1413_p8)
}
 0x151   : > { %s1482_s24 = smov 128   ;;  %s1483_s14 = smov 8  }
 0x152   : > { %1242 = dma.vmem_to_hbm [thread:$0]  (%p1599_p13), %s1772_s11, 4096, %s1770_s18, %s953_s22, %s1482_s24, %s1482_s24, %s1483_s14  }
 0x153 PF: > { %s984_s29 = sand.u32 1, %s1455_s15   ;;  %p1848_p12 = scmp.ne.s32.totalorder %s1838_s26, 0 }
 0x154   : > { %p1849_p0 = scmp.ge.s32.totalorder %s1475_s20, 2  ;;  %s985_s12 = scalar_lea.sflag [#allocation5], %s984_s29 }
 0x156   : > { %p1253_p2 = pnand %p1849_p0, %p1848_p12 }
 0x158   : > { %p1254_p3 = pneg %p1253_p2 }
 0x15a   : > { %1450 = dma.done.wait (%p1254_p3), %s985_s12, 4096  }
 0x15b   : > { %1452 = vsyncadd (%p1254_p3), %s985_s12, 4294963200  ;;  %s21_s20 = sadd.s32 1, %s1475_s20   ;;  %s1850_s15 = smov %s1459_s16 }
 0x15c   : > { %p18_p5 = scmp.ge.s32.totalorder %s21_s20, 4   ;;  %s1851_s16 = smov %s1463_s17 }
 0x15d   : > { %s1852_s17 = smov %s1608_s28  ;;  %s1853_s18 = smov %s1471_s19 }
 0x15e   : > { %s1854_s19 = smov %s1856_s5  ;;  %20 = sbr.rel (!%p18_p5) target bundleno = 9 (0x9), region = 100 }
 0x163   :  { %990 = vsyncpa [#allocation4], 1 }
 0x164   :  { %992 = vsyncpa [#allocation4 + $0x1], 1 }
 0x165   :  { %993 = vsyncpa [#allocation7], 1 }
 0x166   :  { %994 = vsyncpa [#allocation5], 1 }
 0x167   :  { %996 = vsyncpa [#allocation5 + $0x1], 1 }

</bundles_post_ra>
